<compile_context>
chip_gen: v6e
topology: v6e:2x2x1
jax: 0.10.0
libtpu: 0.0.40
codegen_flags: <defaults>
</compile_context>

<pallas_src>
import numpy as np
import jax
import jax.numpy as jnp
from jax.experimental import pallas as pl
from jax.experimental.pallas import tpu as pltpu

# --- static model hyperparameters (BatchNorm1d(128) implies feature length 128)
L_IN = 128                     # input feature length
K = 3                          # conv kernel size
C_OUT = 8                      # conv out channels
L_CONV = L_IN - K + 1          # 126 (valid conv)
POOL_OUT = 50                  # AdaptiveMaxPool1d output size
NUM_CLASSES = 10
NEG_SLOPE = 0.01               # F.leaky_relu default negative_slope
FLAT = C_OUT * POOL_OUT        # 400; PyTorch .view flatten order: col = c*50 + i
FLAT_PAD = 512                 # lane-dense (multiple of 128); cols 400..511 are zero
OUT_PAD = 128                  # fc2 output padded to a full lane group

# AdaptiveMaxPool1d(50) window geometry (PyTorch floor/ceil index formula)
_STARTS = tuple((i * L_CONV) // POOL_OUT for i in range(POOL_OUT))
_ENDS = tuple(-(-((i + 1) * L_CONV) // POOL_OUT) for i in range(POOL_OUT))
_WIDTHS = tuple(e - s for s, e in zip(_STARTS, _ENDS))
W_MAX = max(_WIDTHS)           # = 4 (windows are 3 or 4 wide)


def _round_up(n, m):
    return ((n + m - 1) // m) * m


def net_local_liner_kernel(x_ref, g_ref, bias_ref, w2_ref, o_ref):
    """One batch tile; two MXU matmuls + a few aligned VPU ops.

    x_ref   : (BT, 128)  bf16     input tile
    g_ref   : (128, W_MAX*512) bf16  fused conv-tap + pool-gather matrix
    bias_ref: (1, 512)   f32      conv bias (flattened c*50+i, zero padded)
    w2_ref  : (512, 128) bf16     fc2 weight, transposed and zero padded
    o_ref   : (BT, 128)  f32      logits (first 10 columns valid)
    """
    x = x_ref[...]                                           # (BT, 128) bf16

    # fused Conv1d + AdaptiveMaxPool1d: ONE long MXU contraction, then a
    # 4-way elementwise max over 512-lane-aligned static slices (VPU only).
    y = jnp.dot(x, g_ref[...], preferred_element_type=jnp.float32)  # (BT, 2048) f32
    pooled = y[:, 0:FLAT_PAD]
    for o in range(1, W_MAX):                                # static unroll, W_MAX=4
        pooled = jnp.maximum(pooled, y[:, o * FLAT_PAD:(o + 1) * FLAT_PAD])

    pooled = pooled + bias_ref[...]                          # conv bias (constant per window)

    # leaky_relu: max(p, 0.01*p)  (slope < 1 so this is exact)
    act = jnp.maximum(pooled, NEG_SLOPE * pooled)

    # fc2: single K=512 contraction on the MXU, bf16 inputs / f32 accumulate
    o_ref[...] = jnp.dot(act.astype(w2_ref.dtype), w2_ref[...],
                         preferred_element_type=jnp.float32)


def _build_constants(w_conv, b_conv, w_fc):
    """Fold conv taps into a single fused gather matrix (wrapper glue, f32 math)."""
    # P[o, k, l, i] = 1 iff l == starts[i] + min(o, width_i-1) + k.
    # Clamping o duplicates the last valid offset for width-3 windows, so the
    # max over offsets needs no additive mask.
    P = np.zeros((W_MAX, K, L_IN, POOL_OUT), dtype=np.float32)
    for i in range(POOL_OUT):
        w = _WIDTHS[i]
        for o in range(W_MAX):
            oo = min(o, w - 1)
            for k in range(K):
                P[o, k, _STARTS[i] + oo + k, i] = 1.0

    # G[o, l, c*50+i] = sum_k w_conv[c, k] * P[o, k, l, i]
    G = jnp.einsum('ck,okli->olci',
                   jnp.asarray(w_conv, dtype=jnp.float32), jnp.asarray(P))
    G = G.reshape(W_MAX, L_IN, FLAT)                          # col order c*50+i (= .view)
    G = jnp.pad(G, ((0, 0), (0, 0), (0, FLAT_PAD - FLAT)))    # (4, 128, 512)
    # concatenate the per-offset slabs along N: Gcat[:, o*512:(o+1)*512] = G[o]
    Gcat = jnp.transpose(G, (1, 0, 2)).reshape(L_IN, W_MAX * FLAT_PAD)
    Gcat = Gcat.astype(jnp.bfloat16)                          # (128, 2048)

    bias_flat = jnp.zeros((1, FLAT_PAD), jnp.float32)
    bias_flat = bias_flat.at[0, :FLAT].set(
        jnp.repeat(jnp.asarray(b_conv, jnp.float32), POOL_OUT))

    w2 = jnp.zeros((FLAT_PAD, OUT_PAD), jnp.float32)
    w2 = w2.at[:FLAT, :NUM_CLASSES].set(
        jnp.transpose(jnp.asarray(w_fc, jnp.float32), (1, 0)))
    w2 = w2.astype(jnp.bfloat16)                              # (512, 128)
    return Gcat, bias_flat, w2


def net_local_liner_forward(x, w_conv, b_conv, w_fc, *, b_tile=1024):
    """x: (B, L_IN); w_conv: (C_OUT, K); b_conv: (C_OUT,);
    w_fc: (NUM_CLASSES, C_OUT*POOL_OUT) in PyTorch Linear layout.

    b_tile: sweep 1024-2048 at large B; keep <= ~2048 (v7x has 64 MiB VMEM)
    and ideally make B/b_tile even so both v7x TensorCores get work.
    """
    B = x.shape[0]
    Gcat, bias_flat, w2 = _build_constants(w_conv, b_conv, w_fc)
    x = x.astype(jnp.bfloat16)                                # halves input DMA bytes

    # batch tile: multiple of 8 sublanes, capped so VMEM is independent of B.
    bt = _round_up(min(b_tile, _round_up(B, 8)), 8)
    grid = (pl.cdiv(B, bt),)                                  # no wrapper-side pad of x;
                                                              # ragged last block is masked
    vmem = pl.BlockSpec(memory_space=pltpu.MemorySpace.VMEM)  # small resident weights
    out = pl.pallas_call(
        net_local_liner_kernel,
        out_shape=jax.ShapeDtypeStruct((B, OUT_PAD), jnp.float32),
        grid=grid,
        in_specs=[pl.BlockSpec((bt, L_IN), lambda i: (i, 0)),  # pipelined x tiles
                  vmem, vmem, vmem],
        out_specs=pl.BlockSpec((bt, OUT_PAD), lambda i: (i, 0)),
        compiler_params=pltpu.CompilerParams(
            dimension_semantics=("parallel",),                 # megacore on v7x
            vmem_limit_bytes=48 * 1024 * 1024),
    )(x, Gcat, bias_flat, w2)
    return out[:, :NUM_CLASSES]


def reference_forward(x, w_conv, b_conv, w_fc):
    """Pure-JAX f32 reference mirroring the PyTorch forward."""
    x = x.astype(jnp.float32)
    conv = jnp.stack(
        [sum(w_conv[c, k] * x[:, k:k + L_CONV] for k in range(K)) + b_conv[c]
         for c in range(C_OUT)], axis=1)                               # (B, C, 126)
    pooled = jnp.stack(
        [jnp.max(conv[:, :, _STARTS[i]:_ENDS[i]], axis=-1)
         for i in range(POOL_OUT)], axis=-1)                           # (B, C, 50)
    act = jnp.where(pooled > 0, pooled, NEG_SLOPE * pooled)
    flat = act.reshape(x.shape[0], -1)                                 # (B, 400)
    return flat @ w_fc.T                                               # (B, 10)


if __name__ == "__main__":
    key = jax.random.PRNGKey(0)
    k1, k2, k3, k4, k5 = jax.random.split(key, 5)

    # deterministic synthetic parameters (shapes from __init__)
    a = jax.random.normal(k1, (C_OUT, K), dtype=jnp.float32)
    w_conv, _ = jnp.linalg.qr(a)           # orthonormal columns ~ nn.init.orthogonal_
    w_conv = w_conv.astype(jnp.float32)    # (8, 3)  (squeezed in_channels=1)
    bound_b = 1.0 / np.sqrt(K)
    b_conv = jax.random.uniform(k2, (C_OUT,), minval=-bound_b, maxval=bound_b,
                                dtype=jnp.float32)
    bound_fc = 1.0 / np.sqrt(C_OUT * POOL_OUT)
    w_fc = jax.random.uniform(k3, (NUM_CLASSES, C_OUT * POOL_OUT),
                              minval=-bound_fc, maxval=bound_fc, dtype=jnp.float32)

    # bf16 matmul inputs with f32 accumulation -> loosened tolerance vs f32 ref.
    TOL = dict(rtol=5e-2, atol=5e-2)

    # small primary check (B = 2, single ragged block)
    B = 2
    x = jax.random.normal(k4, (B, L_IN), dtype=jnp.float32)
    out = jax.block_until_ready(net_local_liner_forward(x, w_conv, b_conv, w_fc))
    ref = reference_forward(x, w_conv, b_conv, w_fc)
    np.testing.assert_allclose(np.asarray(out), np.asarray(ref), **TOL)

    # multi-tile check (B = 20, tile 8 -> grid of 3 with a ragged last block)
    x2 = jax.random.normal(k5, (20, L_IN), dtype=jnp.float32)
    out2 = jax.block_until_ready(
        net_local_liner_forward(x2, w_conv, b_conv, w_fc, b_tile=8))
    ref2 = reference_forward(x2, w_conv, b_conv, w_fc)
    np.testing.assert_allclose(np.asarray(out2), np.asarray(ref2), **TOL)

    print("KERNEL_OK")
</pallas_src>

<mosaic_0001>
module attributes {stable_mosaic.version = 11 : i64} {
  func.func @net_local_liner_kernel(%arg0: i32, %arg1: memref<8x128xbf16, #tpu.memory_space<vmem>>, %arg2: memref<128x2048xbf16, #tpu.memory_space<vmem>>, %arg3: memref<1x512xf32, #tpu.memory_space<vmem>>, %arg4: memref<512x128xbf16, #tpu.memory_space<vmem>>, %arg5: memref<8x128xf32, #tpu.memory_space<vmem>>) attributes {dimension_semantics = [#tpu.dimension_semantics<parallel>], iteration_bounds = array<i64: 1>, scalar_prefetch = 0 : i64, scratch_operands = 0 : i64, tpu.core_type = #tpu.core_type<tc>, window_params = [{transform_indices = @transform_0, window_bounds = array<i64: 8, 128>}, {pipeline_mode = #tpu.pipeline_mode<synchronous>, transform_indices = @transform_1, window_bounds = array<i64: 128, 2048>}, {pipeline_mode = #tpu.pipeline_mode<synchronous>, transform_indices = @transform_2, window_bounds = array<i64: 1, 512>}, {pipeline_mode = #tpu.pipeline_mode<synchronous>, transform_indices = @transform_3, window_bounds = array<i64: 512, 128>}, {transform_indices = @transform_4, window_bounds = array<i64: 8, 128>}]} {
    %c0 = arith.constant 0 : index
    %c0_0 = arith.constant 0 : index
    %0 = vector.load %arg1[%c0, %c0_0] : memref<8x128xbf16, #tpu.memory_space<vmem>>, vector<8x128xbf16>
    %c0_1 = arith.constant 0 : index
    %c0_2 = arith.constant 0 : index
    %1 = vector.load %arg2[%c0_1, %c0_2] : memref<128x2048xbf16, #tpu.memory_space<vmem>>, vector<128x2048xbf16>
    %cst = arith.constant dense<0.000000e+00> : vector<8x2048xf32>
    %2 = tpu.matmul %0, %1, %cst {dimension_numbers = #tpu.dot_dimension_numbers<[1], [0], [0], [1], [0, 0, 1, 1], [], []>} : vector<8x128xbf16>, vector<128x2048xbf16>, vector<8x2048xf32> -> vector<8x2048xf32>
    %3 = vector.extract_strided_slice %2 {offsets = [0, 0], sizes = [8, 512], strides = [1, 1]} : vector<8x2048xf32> to vector<8x512xf32>
    %4 = vector.extract_strided_slice %2 {offsets = [0, 512], sizes = [8, 512], strides = [1, 1]} : vector<8x2048xf32> to vector<8x512xf32>
    %5 = arith.maximumf %3, %4 : vector<8x512xf32>
    %6 = vector.extract_strided_slice %2 {offsets = [0, 1024], sizes = [8, 512], strides = [1, 1]} : vector<8x2048xf32> to vector<8x512xf32>
    %7 = arith.maximumf %5, %6 : vector<8x512xf32>
    %8 = vector.extract_strided_slice %2 {offsets = [0, 1536], sizes = [8, 512], strides = [1, 1]} : vector<8x2048xf32> to vector<8x512xf32>
    %9 = arith.maximumf %7, %8 : vector<8x512xf32>
    %c0_3 = arith.constant 0 : index
    %c0_4 = arith.constant 0 : index
    %10 = vector.load %arg3[%c0_3, %c0_4] : memref<1x512xf32, #tpu.memory_space<vmem>>, vector<1x512xf32>
    %11 = vector.broadcast %10 : vector<1x512xf32> to vector<8x512xf32>
    %12 = arith.addf %9, %11 : vector<8x512xf32>
    %cst_5 = arith.constant 0.00999999977 : f32
    %13 = vector.broadcast %cst_5 : f32 to vector<8x512xf32>
    %14 = arith.mulf %13, %12 : vector<8x512xf32>
    %15 = arith.maximumf %12, %14 : vector<8x512xf32>
    %16 = arith.truncf %15 : vector<8x512xf32> to vector<8x512xbf16>
    %c0_6 = arith.constant 0 : index
    %c0_7 = arith.constant 0 : index
    %17 = vector.load %arg4[%c0_6, %c0_7] : memref<512x128xbf16, #tpu.memory_space<vmem>>, vector<512x128xbf16>
    %cst_8 = arith.constant dense<0.000000e+00> : vector<8x128xf32>
    %18 = tpu.matmul %16, %17, %cst_8 {dimension_numbers = #tpu.dot_dimension_numbers<[1], [0], [0], [1], [0, 0, 1, 1], [], []>} : vector<8x512xbf16>, vector<512x128xbf16>, vector<8x128xf32> -> vector<8x128xf32>
    %c0_9 = arith.constant 0 : index
    %c0_10 = arith.constant 0 : index
    %19 = vector.load %arg5[%c0_9, %c0_10] : memref<8x128xf32, #tpu.memory_space<vmem>>, vector<8x128xf32>
    tpu.vector_store %arg5[%c0_9, %c0_10], %18 {strides = array<i32>} : memref<8x128xf32, #tpu.memory_space<vmem>>, vector<8x128xf32>,
    return
  }
  func.func @transform_0(%arg0: i32) -> (i32, i32) {
    %c0_i32 = arith.constant 0 : i32
    %c0_i32_0 = arith.constant 0 : i32
    return %arg0, %c0_i32 : i32, i32
  }
  func.func @transform_1(%arg0: i32) -> (i32, i32) {
    %c0_i32 = arith.constant 0 : i32
    %c0_i32_0 = arith.constant 0 : i32
    %c0_i32_1 = arith.constant 0 : i32
    return %c0_i32, %c0_i32_0 : i32, i32
  }
  func.func @transform_2(%arg0: i32) -> (i32, i32) {
    %c0_i32 = arith.constant 0 : i32
    %c0_i32_0 = arith.constant 0 : i32
    %c0_i32_1 = arith.constant 0 : i32
    return %c0_i32, %c0_i32_0 : i32, i32
  }
  func.func @transform_3(%arg0: i32) -> (i32, i32) {
    %c0_i32 = arith.constant 0 : i32
    %c0_i32_0 = arith.constant 0 : i32
    %c0_i32_1 = arith.constant 0 : i32
    return %c0_i32, %c0_i32_0 : i32, i32
  }
  func.func @transform_4(%arg0: i32) -> (i32, i32) {
    %c0_i32 = arith.constant 0 : i32
    %c0_i32_0 = arith.constant 0 : i32
    return %arg0, %c0_i32 : i32, i32
  }
}

</mosaic_0001>

<bundles_post_ra>
// kernel: tpu_custom_call.1
= control target key start
LH: loop header
LB: loop body
LE: loop exit
PB: predicated region body
PF: predicated region fallthrough
CT: control target
= control target key end

     0   :  { %9 = vsyncpa [#allocation3], 0  ;;  %s2047_s0 = inlined_call_operand.hbm [shape: bf16[2,128], index: 0, kind: input, shape index: {}]   ;;  %s2048_s1 = inlined_call_operand.hbm [shape: bf16[128,2048], index: 1, kind: input, shape index: {}]   ;;  %s2049_s2 = inlined_call_operand.hbm [shape: f32[1,512], index: 2, kind: input, shape index: {}]   ;;  %s2050_s3 = inlined_call_operand.hbm [shape: bf16[512,128], index: 3, kind: input, shape index: {}]   ;;  %s2051_s4 = inlined_call_operand.hbm [shape: f32[2,128], index: 4, kind: output, shape index: {}]  }
   0x1   :  { %10 = vsyncpa [#allocation6], 0 }
   0x2   :  { %11 = vsyncpa [#allocation9], 0 }
   0x3   :  { %12 = vsyncpa [#allocation4], 0 }
   0x4   :  { %17 = vsyncadd [#allocation3], 48  ;;  %s1965_s15 = smov [#allocation5]  }
   0x5   :  { %s30_s16 = sshll.u32 %s1965_s15, 4  ;;  %s31_s16 = int_to_ptr.vmem [resolvable:$true] %s30_s16 }
   0x6   :  { %s1865_s17 = scalar_lea.vmem %s31_s16, 16384  ;;  %p1870_p1 = scmp.lt.s32.totalorder %s31_s16, %s31_s16 }
   0x7   :  { %p1866_p0 = scmp.ne.s32.totalorder %s31_s16, %s1865_s17  ;;  %p1871_p2 = scmp.lt.s32.totalorder %s1865_s17, %s1865_s17 }
   0x9   :  { %p1872_p3 = por %p1871_p2, %p1870_p1 }
   0xb   :  { %p1873_p4 = pnand %p1872_p3, %p1866_p0 }
   0xd   :  { %1876 = shalt.err (!%p1873_p4)
}
   0xe   :  { %s1966_s18 = smov 1024   ;;  %s1967_s19 = smov 64  }
   0xf   :  { %36 = dma.hbm_to_vmem [thread:$0]  %s2048_s1, 16384, %s31_s16, [#allocation6], %s1966_s18, %s1966_s18, %s1967_s19  }
  0x10   :  { %s1968_s22 = smov [#allocation2]  }
  0x11   :  { %s18_s23 = sshll.u32 %s1968_s22, 4  ;;  %s19_s23 = int_to_ptr.vmem [resolvable:$true] %s18_s23 }
  0x12   :  { %s1885_s24 = scalar_lea.vmem %s19_s23, 16  ;;  %s1889_s25 = scalar_lea.vmem %s19_s23, 64 }
  0x13   :  { %p1886_p5 = scmp.ne.s32.totalorder %s19_s23, %s1885_s24  ;;  %p1890_p6 = scmp.lt.s32.totalorder %s19_s23, %s19_s23 }
  0x14   :  { %p1891_p7 = scmp.lt.s32.totalorder %s1889_s25, %s1885_s24 }
  0x16   :  { %p1892_p8 = por %p1891_p7, %p1890_p6 }
  0x18   :  { %p1893_p9 = pnand %p1892_p8, %p1886_p5 }
  0x1a   :  { %1896 = shalt.err (!%p1893_p9)
}
  0x1b   :  { %s1969_s26 = smov 16   ;;  %s1970_s27 = smov 1  }
  0x1c   :  { %24 = dma.hbm_to_vmem [thread:$0]  %s2047_s0, 16, %s19_s23, [#allocation3], %s1969_s26, %s1969_s26, %s1970_s27  }
  0x1d   :  { %s1971_s30 = smov [#allocation7]   ;;  %s1972_s1 = smov [#allocation8]  }
  0x1e   :  { %s43_s5 = sshll.u32 %s1971_s30, 4  ;;  %s52_s6 = sshll.u32 %s1972_s1, 4  ;;  %s44_s5 = int_to_ptr.vmem [resolvable:$true] %s43_s5  ;;  %s53_s6 = int_to_ptr.vmem [resolvable:$true] %s52_s6 }
  0x1f   :  { %s1905_s7 = scalar_lea.vmem %s44_s5, 64  ;;  %p1910_p11 = scmp.lt.s32.totalorder %s44_s5, %s44_s5 }
  0x20   :  { %p1906_p10 = scmp.ne.s32.totalorder %s44_s5, %s1905_s7  ;;  %p1911_p12 = scmp.lt.s32.totalorder %s1905_s7, %s1905_s7 }
  0x22   :  { %p1912_p13 = por %p1911_p12, %p1910_p11 }
  0x24   :  { %p1913_p0 = pnand %p1912_p13, %p1906_p10 }
  0x26   :  { %1916 = shalt.err (!%p1913_p0)
}
  0x27   :  { %46 = dma.hbm_to_vmem [thread:$0]  %s2049_s2, 64, %s44_s5, [#allocation6]  }
  0x28   :  { %s1925_s10 = scalar_lea.vmem %s53_s6, 4096  ;;  %p1930_p2 = scmp.lt.s32.totalorder %s53_s6, %s53_s6 }
  0x29   :  { %p1926_p1 = scmp.ne.s32.totalorder %s53_s6, %s1925_s10  ;;  %p1931_p3 = scmp.lt.s32.totalorder %s1925_s10, %s1925_s10 }
  0x2b   :  { %p1932_p4 = por %p1931_p3, %p1930_p2 }
  0x2d   :  { %p1933_p5 = pnand %p1932_p4, %p1926_p1 }
  0x2f   :  { %1936 = shalt.err (!%p1933_p5)
}
  0x30   :  { %s1973_s0 = smov 4  }
  0x31   :  { %58 = dma.hbm_to_vmem [thread:$0]  %s2050_s3, 4096, %s53_s6, [#allocation9], %s1967_s19, %s1967_s19, %s1973_s0  }
  0x32   :  { %1957 = dma.done.wait [#allocation3], 64  }
  0x33   :  { %1958 = vsyncadd [#allocation3], 4294967232 }
  0x34   :  { %1959 = dma.done.wait [#allocation6], 16448  }
  0x35   :  { %1960 = vsyncadd [#allocation6], 4294950848 }
  0x36   :  { %1961 = dma.done.wait [#allocation9], 4096  }
  0x37   :  { %1962 = vsyncadd [#allocation9], 4294963200  ;;  %v1974_v0 = vmov 0   ;;  %v188_v1 = vld [vmem:[#allocation5 + $0x380] sm:$0xff]  ;;  %v189_v3 = vld [vmem:[#allocation5 + $0x388] sm:$0xff]  ;;  %v213_v37 = vlaneseq }
  0x38   :  { %905 = vmatprep.mubr.bf16.mxu0 %v1974_v0  ;;  %946 = vmatprep.mubr.bf16.mxu1 %v1974_v0  ;;  %v196_v2 = vld [vmem:[#allocation5 + $0x3c0] sm:$0xff]  ;;  %v197_v5 = vld [vmem:[#allocation5 + $0x3c8] sm:$0xff]  ;;  %v1975_v35 = vmov 1966171168   ;;  %v72_v46 = vld [vmem:[#allocation2] sm:$0x1] }
  0x39   :  { %v1720_v4 = vcombine.high %v188_v1, %v196_v2  ;;  %v1719_v6 = vcombine.low %v188_v1, %v196_v2  ;;  %v172_v7 = vld [vmem:[#allocation5 + $0x300] sm:$0xff]  ;;  %v1722_v9 = vcombine.high %v189_v3, %v197_v5  ;;  %v1721_v10 = vcombine.low %v189_v3, %v197_v5  ;;  %v173_v12 = vld [vmem:[#allocation5 + $0x308] sm:$0xff]  ;;  %v73_v50 = vld [vmem:[#allocation2 + $0x1] sm:$0x1] }
  0x3a   :  { %v180_v8 = vld [vmem:[#allocation5 + $0x340] sm:$0xff]  ;;  %v181_v13 = vld [vmem:[#allocation5 + $0x348] sm:$0xff]  ;;  %v211_v36 = vunpack.c.l.s4 %v1975_v35  ;;  %v2021_v48 = vshrl.u32 %v213_v37, 7  ;;  %v74_v51 = vld [vmem:[#allocation2 + $0x2] sm:$0x1]  ;;  %v208_v60 = vcombine.low %v72_v46, %v73_v50 }
  0x3b   :  { %v1704_v11 = vcombine.high %v172_v7, %v180_v8  ;;  %v156_v14 = vld [vmem:[#allocation5 + $0x280] sm:$0xff]  ;;  %873 = vmatprep.subr.bf16.mxu0 %v1720_v4  ;;  %v1706_v15 = vcombine.high %v173_v12, %v181_v13  ;;  %v157_v17 = vld [vmem:[#allocation5 + $0x288] sm:$0xff]  ;;  %914 = vmatprep.subr.bf16.mxu1 %v1722_v9  ;;  %v1703_v19 = vcombine.low %v172_v7, %v180_v8  ;;  %v75_v52 = vld [vmem:[#allocation2 + $0x3] sm:$0x1] }
  0x3c   :  { %v164_v16 = vld [vmem:[#allocation5 + $0x2c0] sm:$0xff]  ;;  %v165_v18 = vld [vmem:[#allocation5 + $0x2c8] sm:$0xff]  ;;  %874 = vmatpush1.bf16.msra.mxu0 %v1719_v6  ;;  %915 = vmatpush1.bf16.msra.mxu1 %v1721_v10  ;;  %v1705_v20 = vcombine.low %v173_v12, %v181_v13  ;;  %v212_v47 = vunpack.c.0.s8 %v211_v36  ;;  %v209_v61 = vcombine.low %v74_v51, %v75_v52  ;;  %v167_v35 = vld [vmem:[#allocation5 + $0x2d8] sm:$0xff] }
  0x3d   :  { %875 = vmatprep.subr.bf16.mxu0 %v1704_v11  ;;  %v1688_v21 = vcombine.high %v156_v14, %v164_v16  ;;  %916 = vmatprep.subr.bf16.mxu1 %v1706_v15  ;;  %v1690_v22 = vcombine.high %v157_v17, %v165_v18  ;;  %v140_v23 = vld [vmem:[#allocation5 + $0x200] sm:$0xff]  ;;  %v141_v25 = vld [vmem:[#allocation5 + $0x208] sm:$0xff]  ;;  %v1687_v27 = vcombine.low %v156_v14, %v164_v16  ;;  %v190_v14 = vld [vmem:[#allocation5 + $0x390] sm:$0xff] }
  0x3e   :  { %v148_v24 = vld [vmem:[#allocation5 + $0x240] sm:$0xff]  ;;  %v149_v26 = vld [vmem:[#allocation5 + $0x248] sm:$0xff]  ;;  %v1689_v28 = vcombine.low %v157_v17, %v165_v18  ;;  %v215_v62 = vsub.s32 %v212_v47, %v2021_v48  ;;  %v198_v15 = vld [vmem:[#allocation5 + $0x3d0] sm:$0xff] }
  0x3f   :  { %v1672_v29 = vcombine.high %v140_v23, %v148_v24  ;;  %v1674_v30 = vcombine.high %v141_v25, %v149_v26  ;;  %v124_v31 = vld [vmem:[#allocation5 + $0x180] sm:$0xff]  ;;  %v125_v33 = vld [vmem:[#allocation5 + $0x188] sm:$0xff]  ;;  %v1671_v38 = vcombine.low %v140_v23, %v148_v24  ;;  %v1673_v39 = vcombine.low %v141_v25, %v149_v26  ;;  %v191_v17 = vld [vmem:[#allocation5 + $0x398] sm:$0xff] }
  0x40   :  { %876 = vmatpush1.bf16.msra.mxu0 %v1703_v19  ;;  %917 = vmatpush1.bf16.msra.mxu1 %v1705_v20  ;;  %v132_v32 = vld [vmem:[#allocation5 + $0x1c0] sm:$0xff]  ;;  %v133_v34 = vld [vmem:[#allocation5 + $0x1c8] sm:$0xff]  ;;  %v216_v8 = vrot.slane %v208_v60, %v215_v62  ;;  %v223_v9 = vrot.slane %v209_v61, %v215_v62  ;;  %v199_v18 = vld [vmem:[#allocation5 + $0x3d8] sm:$0xff] }
  0x41   :  { %877 = vmatprep.subr.bf16.mxu0 %v1688_v21  ;;  %918 = vmatprep.subr.bf16.mxu1 %v1690_v22  ;;  %v1656_v40 = vcombine.high %v124_v31, %v132_v32  ;;  %v1658_v41 = vcombine.high %v125_v33, %v133_v34  ;;  %v108_v42 = vld [vmem:[#allocation5 + $0x100] sm:$0xff]  ;;  %v109_v44 = vld [vmem:[#allocation5 + $0x108] sm:$0xff]  ;;  %v1655_v49 = vcombine.low %v124_v31, %v132_v32  ;;  %v174_v23 = vld [vmem:[#allocation5 + $0x310] sm:$0xff] }
  0x42   :  { %v116_v43 = vld [vmem:[#allocation5 + $0x140] sm:$0xff]  ;;  %v117_v45 = vld [vmem:[#allocation5 + $0x148] sm:$0xff]  ;;  %v1657_v53 = vcombine.low %v125_v33, %v133_v34  ;;  %v224_v16 = vcombine.low %v216_v8, %v223_v9  ;;  %v1724_v21 = vcombine.high %v190_v14, %v198_v15  ;;  %v1726_v22 = vcombine.high %v191_v17, %v199_v18  ;;  %v182_v24 = vld [vmem:[#allocation5 + $0x350] sm:$0xff] }
  0x43   :  { %v1640_v54 = vcombine.high %v108_v42, %v116_v43  ;;  %v1642_v55 = vcombine.high %v109_v44, %v117_v45  ;;  %v92_v56 = vld [vmem:[#allocation5 + $0x80] sm:$0xff]  ;;  %v93_v58 = vld [vmem:[#allocation5 + $0x88] sm:$0xff]  ;;  %v1639_v63 = vcombine.low %v108_v42, %v116_v43  ;;  %v1641_v1 = vcombine.low %v109_v44, %v117_v45  ;;  %v175_v26 = vld [vmem:[#allocation5 + $0x318] sm:$0xff] }
  0x44   :  { %878 = vmatpush1.bf16.msra.mxu0 %v1687_v27  ;;  %919 = vmatpush1.bf16.msra.mxu1 %v1689_v28  ;;  %v100_v57 = vld [vmem:[#allocation5 + $0xc0] sm:$0xff]  ;;  %v101_v59 = vld [vmem:[#allocation5 + $0xc8] sm:$0xff]  ;;  %v2024_v25 = vrot.slane %v224_v16, %v215_v62  ;;  %v183_v27 = vld [vmem:[#allocation5 + $0x358] sm:$0xff]  ;;  %v1723_v28 = vcombine.low %v190_v14, %v198_v15  ;;  %v1707_v36 = vcombine.low %v174_v23, %v182_v24 }
  0x45   :  { %879 = vmatprep.subr.bf16.mxu0 %v1672_v29  ;;  %920 = vmatprep.subr.bf16.mxu1 %v1674_v30  ;;  %v1624_v2 = vcombine.high %v92_v56, %v100_v57  ;;  %v1626_v3 = vcombine.high %v93_v58, %v101_v59  ;;  %v76_v4 = vld [vmem:[#allocation5] sm:$0xff]  ;;  %v77_v6 = vld [vmem:[#allocation5 + $0x8] sm:$0xff]  ;;  %v1623_v10 = vcombine.low %v92_v56, %v100_v57  ;;  %v158_v32 = vld [vmem:[#allocation5 + $0x290] sm:$0xff] }
  0x46   :  { %v84_v5 = vld [vmem:[#allocation5 + $0x40] sm:$0xff]  ;;  %v85_v7 = vld [vmem:[#allocation5 + $0x48] sm:$0xff]  ;;  %v1625_v11 = vcombine.low %v93_v58, %v101_v59  ;;  %v1725_v29 = vcombine.low %v191_v17, %v199_v18  ;;  %v1708_v30 = vcombine.high %v174_v23, %v182_v24  ;;  %v1710_v31 = vcombine.high %v175_v26, %v183_v27  ;;  %v166_v33 = vld [vmem:[#allocation5 + $0x2d0] sm:$0xff] }
  0x47   :  { %v1608_v12 = vcombine.high %v76_v4, %v84_v5  ;;  %v1610_v13 = vcombine.high %v77_v6, %v85_v7  ;;  %v1607_v19 = vcombine.low %v76_v4, %v84_v5  ;;  %v1609_v20 = vcombine.low %v77_v6, %v85_v7  ;;  %v159_v34 = vld [vmem:[#allocation5 + $0x298] sm:$0xff]  ;;  %v134_v50 = vld [vmem:[#allocation5 + $0x1d0] sm:$0xff]  ;;  %v192_v15 = vld [vmem:[#allocation5 + $0x3a0] sm:$0xff] }
  0x48   :  { %880 = vmatpush1.bf16.msra.mxu0 %v1671_v38  ;;  %921 = vmatpush1.bf16.msra.mxu1 %v1673_v39  ;;  %v1709_v37 = vcombine.low %v175_v26, %v183_v27  ;;  %v1692_v38 = vcombine.high %v158_v32, %v166_v33  ;;  %v1694_v39 = vcombine.high %v159_v34, %v167_v35  ;;  %v143_v42 = vld [vmem:[#allocation5 + $0x218] sm:$0xff]  ;;  %v94_v62 = vld [vmem:[#allocation5 + $0x90] sm:$0xff]  ;;  %v200_v16 = vld [vmem:[#allocation5 + $0x3e0] sm:$0xff] }
  0x49   :  { %881 = vmatprep.subr.bf16.mxu0 %v1656_v40  ;;  %922 = vmatprep.subr.bf16.mxu1 %v1658_v41  ;;  %v142_v40 = vld [vmem:[#allocation5 + $0x210] sm:$0xff]  ;;  %v151_v43 = vld [vmem:[#allocation5 + $0x258] sm:$0xff]  ;;  %v1691_v44 = vcombine.low %v158_v32, %v166_v33  ;;  %v1693_v45 = vcombine.low %v159_v34, %v167_v35  ;;  %v176_v23 = vld [vmem:[#allocation5 + $0x320] sm:$0xff]  ;;  %v1728_v27 = vcombine.high %v192_v15, %v200_v16 }
  0x4a   :  { %v150_v41 = vld [vmem:[#allocation5 + $0x250] sm:$0xff]  ;;  %v1678_v47 = vcombine.high %v143_v42, %v151_v43  ;;  %v127_v51 = vld [vmem:[#allocation5 + $0x198] sm:$0xff]  ;;  %v1677_v56 = vcombine.low %v143_v42, %v151_v43  ;;  %v184_v24 = vld [vmem:[#allocation5 + $0x360] sm:$0xff] }
  0x4b   :  { %v1676_v46 = vcombine.high %v142_v40, %v150_v41  ;;  %v135_v52 = vld [vmem:[#allocation5 + $0x1d8] sm:$0xff]  ;;  %v78_v7 = vld [vmem:[#allocation5 + $0x10] sm:$0xff]  ;;  %v1712_v33 = vcombine.high %v176_v23, %v184_v24  ;;  %v160_v35 = vld [vmem:[#allocation5 + $0x2a0] sm:$0xff] }
  0x4c   :  { %882 = vmatpush1.bf16.msra.mxu0 %v1655_v49  ;;  %923 = vmatpush1.bf16.msra.mxu1 %v1657_v53  ;;  %v126_v49 = vld [vmem:[#allocation5 + $0x190] sm:$0xff]  ;;  %v1675_v53 = vcombine.low %v142_v40, %v150_v41  ;;  %v111_v58 = vld [vmem:[#allocation5 + $0x118] sm:$0xff]  ;;  %v1662_v60 = vcombine.high %v127_v51, %v135_v52  ;;  %v144_v43 = vld [vmem:[#allocation5 + $0x220] sm:$0xff] }
  0x4d   :  { %883 = vmatprep.subr.bf16.mxu0 %v1640_v54  ;;  %924 = vmatprep.subr.bf16.mxu1 %v1642_v55  ;;  %v110_v54 = vld [vmem:[#allocation5 + $0x110] sm:$0xff]  ;;  %v1660_v57 = vcombine.high %v126_v49, %v134_v50  ;;  %v119_v59 = vld [vmem:[#allocation5 + $0x158] sm:$0xff]  ;;  %v1659_v61 = vcombine.low %v126_v49, %v134_v50 }
  0x4e   :  { %v118_v55 = vld [vmem:[#allocation5 + $0x150] sm:$0xff]  ;;  %v103_v4 = vld [vmem:[#allocation5 + $0xd8] sm:$0xff]  ;;  %v1646_v5 = vcombine.high %v111_v58, %v119_v59  ;;  %v1645_v9 = vcombine.low %v111_v58, %v119_v59 }
  0x4f   :  { %v1643_v6 = vcombine.low %v110_v54, %v118_v55  ;;  %v86_v8 = vld [vmem:[#allocation5 + $0x50] sm:$0xff] }
  0x50   :  { %884 = vmatpush1.bf16.msra.mxu0 %v1639_v63  ;;  %925 = vmatpush1.bf16.msra.mxu1 %v1641_v1  ;;  %v102_v63 = vld [vmem:[#allocation5 + $0xd0] sm:$0xff]  ;;  %v1661_v1 = vcombine.low %v127_v51, %v135_v52  ;;  %v1612_v18 = vcombine.high %v78_v7, %v86_v8  ;;  %v128_v52 = vld [vmem:[#allocation5 + $0x1a0] sm:$0xff] }
  0x51   :  { %885 = vmatprep.subr.bf16.mxu0 %v1624_v2  ;;  %926 = vmatprep.subr.bf16.mxu1 %v1626_v3  ;;  %v1644_v2 = vcombine.high %v110_v54, %v118_v55  ;;  %v95_v3 = vld [vmem:[#allocation5 + $0x98] sm:$0xff]  ;;  %v1627_v14 = vcombine.low %v94_v62, %v102_v63  ;;  %v129_v54 = vld [vmem:[#allocation5 + $0x1a8] sm:$0xff] }
  0x52   :  { %v1629_v17 = vcombine.low %v95_v3, %v103_v4  ;;  %v137_v55 = vld [vmem:[#allocation5 + $0x1e8] sm:$0xff] }
  0x53   :  { %v1666_v59 = vcombine.high %v129_v54, %v137_v55 }
  0x54   :  { %886 = vmatpush1.bf16.msra.mxu0 %v1623_v10  ;;  %927 = vmatpush1.bf16.msra.mxu1 %v1625_v11  ;;  %v1628_v10 = vcombine.high %v94_v62, %v102_v63  ;;  %v79_v11 = vld [vmem:[#allocation5 + $0x18] sm:$0xff]  ;;  %v113_v62 = vld [vmem:[#allocation5 + $0x128] sm:$0xff] }
  0x55   :  { %887 = vmatprep.subr.bf16.mxu0 %v1608_v12  ;;  %928 = vmatprep.subr.bf16.mxu1 %v1610_v13  ;;  %v87_v12 = vld [vmem:[#allocation5 + $0x58] sm:$0xff]  ;;  %v1630_v13 = vcombine.high %v95_v3, %v103_v4  ;;  %v121_v63 = vld [vmem:[#allocation5 + $0x168] sm:$0xff] }
  0x56   :  { %v1613_v26 = vcombine.low %v79_v11, %v87_v12  ;;  %v1650_v4 = vcombine.high %v113_v62, %v121_v63 }
  0x58   :  { %888 = vmatpush1.bf16.msra.mxu0 %v1607_v19  ;;  %929 = vmatpush1.bf16.msra.mxu1 %v1609_v20  ;;  %v193_v19 = vld [vmem:[#allocation5 + $0x3a8] sm:$0xff] }
  0x59   :  { %955 = vmatprep.subr.bf16.mxu0 %v1724_v21  ;;  %996 = vmatprep.subr.bf16.mxu1 %v1726_v22  ;;  %v201_v20 = vld [vmem:[#allocation5 + $0x3e8] sm:$0xff]  ;;  %v1614_v21 = vcombine.high %v79_v11, %v87_v12  ;;  %v1611_v22 = vcombine.low %v78_v7, %v86_v8 }
  0x5a   :  { %v1729_v32 = vcombine.low %v193_v19, %v201_v20  ;;  %v97_v7 = vld [vmem:[#allocation5 + $0xa8] sm:$0xff] }
  0x5b   :  { %906 = vmatmul.mubr.bf16.vlgmr.msra.gmra.mxu0 %v2024_v25  ;;  %947 = vmatmul.mubr.bf16.vlgmr.msra.gmra.mxu1 %v2024_v25  ;;  %v105_v8 = vld [vmem:[#allocation5 + $0xe8] sm:$0xff] }
  0x5c   :  { %956 = vmatpush1.bf16.msra.mxu0 %v1723_v28  ;;  %997 = vmatpush1.bf16.msra.mxu1 %v1725_v29  ;;  %v177_v28 = vld [vmem:[#allocation5 + $0x328] sm:$0xff]  ;;  %v1634_v12 = vcombine.high %v97_v7, %v105_v8 }
  0x5d   :  { %957 = vmatprep.subr.bf16.mxu0 %v1708_v30  ;;  %998 = vmatprep.subr.bf16.mxu1 %v1710_v31  ;;  %v185_v29 = vld [vmem:[#allocation5 + $0x368] sm:$0xff]  ;;  %v1730_v30 = vcombine.high %v193_v19, %v201_v20  ;;  %v1727_v31 = vcombine.low %v192_v15, %v200_v16 }
  0x5e   :  { %987 = vmatprep.mubr.bf16.mxu0 %v1974_v0  ;;  %1028 = vmatprep.mubr.bf16.mxu1 %v1974_v0  ;;  %v1714_v34 = vcombine.high %v177_v28, %v185_v29  ;;  %v1713_v40 = vcombine.low %v177_v28, %v185_v29  ;;  %v81_v15 = vld [vmem:[#allocation5 + $0x28] sm:$0xff] }
  0x5f   :  { %v89_v16 = vld [vmem:[#allocation5 + $0x68] sm:$0xff] }
  0x60   :  { %958 = vmatpush1.bf16.msra.mxu0 %v1707_v36  ;;  %999 = vmatpush1.bf16.msra.mxu1 %v1709_v37  ;;  %v168_v36 = vld [vmem:[#allocation5 + $0x2e0] sm:$0xff]  ;;  %v161_v37 = vld [vmem:[#allocation5 + $0x2a8] sm:$0xff]  ;;  %v1618_v20 = vcombine.high %v81_v15, %v89_v16 }
  0x61   :  { %959 = vmatprep.subr.bf16.mxu0 %v1692_v38  ;;  %1000 = vmatprep.subr.bf16.mxu1 %v1694_v39  ;;  %v169_v38 = vld [vmem:[#allocation5 + $0x2e8] sm:$0xff]  ;;  %v1711_v39 = vcombine.low %v176_v23, %v184_v24  ;;  %v1696_v41 = vcombine.high %v160_v35, %v168_v36  ;;  %v195_v23 = vld [vmem:[#allocation5 + $0x3b8] sm:$0xff] }
  0x62   :  { %v1698_v42 = vcombine.high %v161_v37, %v169_v38  ;;  %v1697_v49 = vcombine.low %v161_v37, %v169_v38  ;;  %v203_v24 = vld [vmem:[#allocation5 + $0x3f8] sm:$0xff]  ;;  %v162_v38 = vld [vmem:[#allocation5 + $0x2b0] sm:$0xff] }
  0x63   :  { %v1734_v29 = vcombine.high %v195_v23, %v203_v24 }
  0x64   :  { %960 = vmatpush1.bf16.msra.mxu0 %v1691_v44  ;;  %1001 = vmatpush1.bf16.msra.mxu1 %v1693_v45  ;;  %v152_v44 = vld [vmem:[#allocation5 + $0x260] sm:$0xff]  ;;  %v145_v45 = vld [vmem:[#allocation5 + $0x228] sm:$0xff] }
  0x65   :  { %961 = vmatprep.subr.bf16.mxu0 %v1676_v46  ;;  %1002 = vmatprep.subr.bf16.mxu1 %v1678_v47  ;;  %v153_v46 = vld [vmem:[#allocation5 + $0x268] sm:$0xff]  ;;  %v1695_v47 = vcombine.low %v160_v35, %v168_v36  ;;  %v1680_v50 = vcombine.high %v144_v43, %v152_v44  ;;  %v1733_v35 = vcombine.low %v195_v23, %v203_v24 }
  0x66   :  { %v1682_v51 = vcombine.high %v145_v45, %v153_v46 }
  0x68   :  { %962 = vmatpush1.bf16.msra.mxu0 %v1675_v53  ;;  %1003 = vmatpush1.bf16.msra.mxu1 %v1677_v56  ;;  %v136_v53 = vld [vmem:[#allocation5 + $0x1e0] sm:$0xff]  ;;  %v1679_v56 = vcombine.low %v144_v43, %v152_v44 }
  0x69   :  { %963 = vmatprep.subr.bf16.mxu0 %v1660_v57  ;;  %1004 = vmatprep.subr.bf16.mxu1 %v1662_v60  ;;  %v1681_v57 = vcombine.low %v145_v45, %v153_v46  ;;  %v1664_v58 = vcombine.high %v128_v52, %v136_v53  ;;  %v112_v60 = vld [vmem:[#allocation5 + $0x120] sm:$0xff]  ;;  %v146_v46 = vld [vmem:[#allocation5 + $0x230] sm:$0xff] }
  0x6c   :  { %964 = vmatpush1.bf16.msra.mxu0 %v1659_v61  ;;  %1005 = vmatpush1.bf16.msra.mxu1 %v1661_v1  ;;  %v120_v61 = vld [vmem:[#allocation5 + $0x160] sm:$0xff]  ;;  %v1663_v1 = vcombine.low %v128_v52, %v136_v53 }
  0x6d   :  { %965 = vmatprep.subr.bf16.mxu0 %v1644_v2  ;;  %1006 = vmatprep.subr.bf16.mxu1 %v1646_v5  ;;  %v1665_v2 = vcombine.low %v129_v54, %v137_v55  ;;  %v1648_v3 = vcombine.high %v112_v60, %v120_v61  ;;  %v96_v5 = vld [vmem:[#allocation5 + $0xa0] sm:$0xff]  ;;  %v130_v55 = vld [vmem:[#allocation5 + $0x1b0] sm:$0xff] }
  0x70   :  { %966 = vmatpush1.bf16.msra.mxu0 %v1643_v6  ;;  %1007 = vmatpush1.bf16.msra.mxu1 %v1645_v9  ;;  %v104_v6 = vld [vmem:[#allocation5 + $0xe0] sm:$0xff]  ;;  %v1647_v9 = vcombine.low %v112_v60, %v120_v61 }
  0x71   :  { %967 = vmatprep.subr.bf16.mxu0 %v1628_v10  ;;  %1008 = vmatprep.subr.bf16.mxu1 %v1630_v13  ;;  %v1649_v10 = vcombine.low %v113_v62, %v121_v63  ;;  %v1632_v11 = vcombine.high %v96_v5, %v104_v6  ;;  %v80_v13 = vld [vmem:[#allocation5 + $0x20] sm:$0xff]  ;;  %v114_v62 = vld [vmem:[#allocation5 + $0x130] sm:$0xff] }
  0x72   :  { %v122_v63 = vld [vmem:[#allocation5 + $0x170] sm:$0xff] }
  0x74   :  { %968 = vmatpush1.bf16.msra.mxu0 %v1627_v14  ;;  %1009 = vmatpush1.bf16.msra.mxu1 %v1629_v17  ;;  %v88_v14 = vld [vmem:[#allocation5 + $0x60] sm:$0xff]  ;;  %v1631_v17 = vcombine.low %v96_v5, %v104_v6  ;;  %v1652_v5 = vcombine.high %v114_v62, %v122_v63 }
  0x75   :  { %969 = vmatprep.subr.bf16.mxu0 %v1612_v18  ;;  %1010 = vmatprep.subr.bf16.mxu1 %v1614_v21  ;;  %v1633_v18 = vcombine.low %v97_v7, %v105_v8  ;;  %v1616_v19 = vcombine.high %v80_v13, %v88_v14  ;;  %v194_v21 = vld [vmem:[#allocation5 + $0x3b0] sm:$0xff] }
  0x76   :  { %v98_v7 = vld [vmem:[#allocation5 + $0xb0] sm:$0xff] }
  0x77   :  { %v106_v8 = vld [vmem:[#allocation5 + $0xf0] sm:$0xff] }
  0x78   :  { %970 = vmatpush1.bf16.msra.mxu0 %v1611_v22  ;;  %1011 = vmatpush1.bf16.msra.mxu1 %v1613_v26  ;;  %v202_v22 = vld [vmem:[#allocation5 + $0x3f0] sm:$0xff]  ;;  %v1615_v26 = vcombine.low %v80_v13, %v88_v14  ;;  %v1636_v13 = vcombine.high %v98_v7, %v106_v8 }
  0x79   :  { %1037 = vmatprep.subr.bf16.mxu0 %v1728_v27  ;;  %1078 = vmatprep.subr.bf16.mxu1 %v1730_v30  ;;  %v1617_v27 = vcombine.low %v81_v15, %v89_v16  ;;  %v1732_v28 = vcombine.high %v194_v21, %v202_v22  ;;  %v178_v30 = vld [vmem:[#allocation5 + $0x330] sm:$0xff] }
  0x7a   :  { %v82_v15 = vld [vmem:[#allocation5 + $0x30] sm:$0xff] }
  0x7b   :  { %988 = vmatmul.mubr.bf16.vlgmr.msra.gmra.mxu0 %v2024_v25  ;;  %1029 = vmatmul.mubr.bf16.vlgmr.msra.gmra.mxu1 %v2024_v25  ;;  %v90_v16 = vld [vmem:[#allocation5 + $0x70] sm:$0xff] }
  0x7c   :  { %1038 = vmatpush1.bf16.msra.mxu0 %v1727_v31  ;;  %1079 = vmatpush1.bf16.msra.mxu1 %v1729_v32  ;;  %v186_v31 = vld [vmem:[#allocation5 + $0x370] sm:$0xff]  ;;  %v179_v32 = vld [vmem:[#allocation5 + $0x338] sm:$0xff]  ;;  %v1619_v23 = vcombine.low %v82_v15, %v90_v16 }
  0x7d   :  { %1039 = vmatprep.subr.bf16.mxu0 %v1712_v33  ;;  %1080 = vmatprep.subr.bf16.mxu1 %v1714_v34  ;;  %v187_v33 = vld [vmem:[#allocation5 + $0x378] sm:$0xff]  ;;  %v1731_v34 = vcombine.low %v194_v21, %v202_v22  ;;  %v1716_v36 = vcombine.high %v178_v30, %v186_v31  ;;  %v1620_v21 = vcombine.high %v82_v15, %v90_v16 }
  0x7e   :  { %1069 = vmatprep.mubr.bf16.mxu0 %v1974_v0  ;;  %1110 = vmatprep.mubr.bf16.mxu1 %v1974_v0  ;;  %v1718_v37 = vcombine.high %v179_v32, %v187_v33  ;;  %v1717_v43 = vcombine.low %v179_v32, %v187_v33  ;;  %v1831_v32 = vld [vmem:[#allocation8 + $0x30] sm:$0xff]  }
  0x7f   :  { %v1832_v33 = vld [vmem:[#allocation8 + $0xb0] sm:$0xff]  }
  0x80   :  { %1040 = vmatpush1.bf16.msra.mxu0 %v1711_v39  ;;  %1081 = vmatpush1.bf16.msra.mxu1 %v1713_v40  ;;  %v170_v39 = vld [vmem:[#allocation5 + $0x2f0] sm:$0xff]  ;;  %v163_v40 = vld [vmem:[#allocation5 + $0x2b8] sm:$0xff] }
  0x81   :  { %1041 = vmatprep.subr.bf16.mxu0 %v1696_v41  ;;  %1082 = vmatprep.subr.bf16.mxu1 %v1698_v42  ;;  %v171_v41 = vld [vmem:[#allocation5 + $0x2f8] sm:$0xff]  ;;  %v1715_v42 = vcombine.low %v178_v30, %v186_v31  ;;  %v1700_v44 = vcombine.high %v162_v38, %v170_v39 }
  0x82   :  { %v1702_v45 = vcombine.high %v163_v40, %v171_v41  ;;  %v1701_v52 = vcombine.low %v163_v40, %v171_v41  ;;  %v1829_v30 = vld [vmem:[#allocation8 + $0x70] sm:$0xff]   ;;  %v1840_v40 = vld [vmem:[#allocation8 + $0xa0] sm:$0xff]   ;;  %v1841_v41 = vld [vmem:[#allocation8 + $0x58] sm:$0xff]  }
  0x83   :  { %v1830_v31 = vld [vmem:[#allocation8 + $0xf0] sm:$0xff]  }
  0x84   :  { %1042 = vmatpush1.bf16.msra.mxu0 %v1695_v47  ;;  %1083 = vmatpush1.bf16.msra.mxu1 %v1697_v49  ;;  %v154_v47 = vld [vmem:[#allocation5 + $0x270] sm:$0xff]  ;;  %v147_v49 = vld [vmem:[#allocation5 + $0x238] sm:$0xff] }
  0x85   :  { %1043 = vmatprep.subr.bf16.mxu0 %v1680_v50  ;;  %1084 = vmatprep.subr.bf16.mxu1 %v1682_v51  ;;  %v155_v50 = vld [vmem:[#allocation5 + $0x278] sm:$0xff]  ;;  %v1699_v51 = vcombine.low %v162_v38, %v170_v39  ;;  %v1684_v53 = vcombine.high %v146_v46, %v154_v47  ;;  %v1838_v38 = vld [vmem:[#allocation8 + $0xe0] sm:$0xff]  }
  0x86   :  { %v1686_v54 = vcombine.high %v147_v49, %v155_v50  ;;  %v1685_v60 = vcombine.low %v147_v49, %v155_v50  ;;  %v1839_v39 = vld [vmem:[#allocation8 + $0x20] sm:$0xff]   ;;  %v1848_v49 = vld [vmem:[#allocation8 + $0x90] sm:$0xff]   ;;  %v1849_v50 = vld [vmem:[#allocation8 + $0x48] sm:$0xff]  }
  0x88   :  { %1044 = vmatpush1.bf16.msra.mxu0 %v1679_v56  ;;  %1085 = vmatpush1.bf16.msra.mxu1 %v1681_v57  ;;  %v138_v56 = vld [vmem:[#allocation5 + $0x1f0] sm:$0xff]  ;;  %v131_v57 = vld [vmem:[#allocation5 + $0x1b8] sm:$0xff] }
  0x89   :  { %1045 = vmatprep.subr.bf16.mxu0 %v1664_v58  ;;  %1086 = vmatprep.subr.bf16.mxu1 %v1666_v59  ;;  %v139_v58 = vld [vmem:[#allocation5 + $0x1f8] sm:$0xff]  ;;  %v1683_v59 = vcombine.low %v146_v46, %v154_v47  ;;  %v1668_v61 = vcombine.high %v130_v55, %v138_v56 }
  0x8a   :  { %v1846_v46 = vld [vmem:[#allocation8 + $0xd0] sm:$0xff]  }
  0x8b   :  { %v1847_v47 = vld [vmem:[#allocation8 + $0x10] sm:$0xff]  }
  0x8c   :  { %1046 = vmatpush1.bf16.msra.mxu0 %v1663_v1  ;;  %1087 = vmatpush1.bf16.msra.mxu1 %v1665_v2  ;;  %v115_v1 = vld [vmem:[#allocation5 + $0x138] sm:$0xff] }
  0x8d   :  { %1047 = vmatprep.subr.bf16.mxu0 %v1648_v3  ;;  %1088 = vmatprep.subr.bf16.mxu1 %v1650_v4  ;;  %v123_v2 = vld [vmem:[#allocation5 + $0x178] sm:$0xff]  ;;  %v1667_v3 = vcombine.low %v130_v55, %v138_v56  ;;  %v1669_v4 = vcombine.low %v131_v57, %v139_v58  ;;  %v1854_v55 = vld [vmem:[#allocation8 + $0xc0] sm:$0xff]  }
  0x8e   :  { %v1654_v6 = vcombine.high %v115_v1, %v123_v2  ;;  %v1855_v56 = vld [vmem:[#allocation8] sm:$0xff]  }
  0x90   :  { %1048 = vmatpush1.bf16.msra.mxu0 %v1647_v9  ;;  %1089 = vmatpush1.bf16.msra.mxu1 %v1649_v10  ;;  %v99_v9 = vld [vmem:[#allocation5 + $0xb8] sm:$0xff] }
  0x91   :  { %1049 = vmatprep.subr.bf16.mxu0 %v1632_v11  ;;  %1090 = vmatprep.subr.bf16.mxu1 %v1634_v12  ;;  %v107_v10 = vld [vmem:[#allocation5 + $0xf8] sm:$0xff]  ;;  %v1651_v11 = vcombine.low %v114_v62, %v122_v63  ;;  %v1653_v12 = vcombine.low %v115_v1, %v123_v2 }
  0x92   :  { %v1638_v14 = vcombine.high %v99_v9, %v107_v10 }
  0x94   :  { %1050 = vmatpush1.bf16.msra.mxu0 %v1631_v17  ;;  %1091 = vmatpush1.bf16.msra.mxu1 %v1633_v18  ;;  %v83_v17 = vld [vmem:[#allocation5 + $0x38] sm:$0xff] }
  0x95   :  { %1051 = vmatprep.subr.bf16.mxu0 %v1616_v19  ;;  %1092 = vmatprep.subr.bf16.mxu1 %v1618_v20  ;;  %v91_v18 = vld [vmem:[#allocation5 + $0x78] sm:$0xff]  ;;  %v1635_v19 = vcombine.low %v98_v7, %v106_v8  ;;  %v1637_v20 = vcombine.low %v99_v9, %v107_v10 }
  0x96   :  { %v1622_v22 = vcombine.high %v83_v17, %v91_v18  ;;  %v1621_v24 = vcombine.low %v83_v17, %v91_v18  ;;  %v1217_v18 = vsub.s32 0, %v2021_v48 }
  0x98   :  { %1052 = vmatpush1.bf16.msra.mxu0 %v1615_v26  ;;  %1093 = vmatpush1.bf16.msra.mxu1 %v1617_v27  ;;  %v1825_v26 = vld [vmem:[#allocation8 + $0x78] sm:$0xff]  }
  0x99   :  { %1119 = vmatprep.subr.bf16.mxu0 %v1732_v28  ;;  %1160 = vmatprep.subr.bf16.mxu1 %v1734_v29  ;;  %v1826_v27 = vld [vmem:[#allocation8 + $0xf8] sm:$0xff]  }
  0x9a   :  { %v1827_v28 = vld [vmem:[#allocation8 + $0x38] sm:$0xff]  }
  0x9b   :  { %1070 = vmatmul.mubr.bf16.vlgmr.msra.gmra.mxu0 %v2024_v25  ;;  %1111 = vmatmul.mubr.bf16.vlgmr.msra.gmra.mxu1 %v2024_v25  ;;  %v1828_v29 = vld [vmem:[#allocation8 + $0xb8] sm:$0xff]  }
  0x9c   :  { %1120 = vmatpush1.bf16.msra.mxu0 %v1731_v34  ;;  %1161 = vmatpush1.bf16.msra.mxu1 %v1733_v35  ;;  %v1833_v34 = vld [vmem:[#allocation8 + $0x68] sm:$0xff]  }
  0x9d   :  { %1121 = vmatprep.subr.bf16.mxu0 %v1716_v36  ;;  %1162 = vmatprep.subr.bf16.mxu1 %v1718_v37  ;;  %v1834_v35 = vld [vmem:[#allocation8 + $0xe8] sm:$0xff]   ;;  %v1837_v37 = vld [vmem:[#allocation8 + $0x60] sm:$0xff]  }
  0x9e   :  { %1151 = vmatprep.mubr.bf16.mxu0 %v1974_v0  ;;  %1192 = vmatprep.mubr.bf16.mxu1 %v1974_v0  ;;  %v1670_v0 = vcombine.high %v131_v57, %v139_v58  ;;  %v1835_v36 = vld [vmem:[#allocation8 + $0x28] sm:$0xff]   ;;  %v1856_v57 = vld [vmem:[#allocation8 + $0x80] sm:$0xff]  }
  0xa0   :  { %1122 = vmatpush1.bf16.msra.mxu0 %v1715_v42  ;;  %1163 = vmatpush1.bf16.msra.mxu1 %v1717_v43  ;;  %v1842_v42 = vld [vmem:[#allocation8 + $0xd8] sm:$0xff]  }
  0xa1   :  { %1123 = vmatprep.subr.bf16.mxu0 %v1700_v44  ;;  %1164 = vmatprep.subr.bf16.mxu1 %v1702_v45  ;;  %v1843_v43 = vld [vmem:[#allocation8 + $0x18] sm:$0xff]   ;;  %v1845_v45 = vld [vmem:[#allocation8 + $0x50] sm:$0xff]  }
  0xa2   :  { %v1844_v44 = vld [vmem:[#allocation8 + $0x98] sm:$0xff]  }
  0xa4   :  { %1124 = vmatpush1.bf16.msra.mxu0 %v1699_v51  ;;  %1165 = vmatpush1.bf16.msra.mxu1 %v1701_v52  ;;  %v1850_v51 = vld [vmem:[#allocation8 + $0xc8] sm:$0xff]  }
  0xa5   :  { %1125 = vmatprep.subr.bf16.mxu0 %v1684_v53  ;;  %1166 = vmatprep.subr.bf16.mxu1 %v1686_v54  ;;  %v1851_v52 = vld [vmem:[#allocation8 + $0x8] sm:$0xff]   ;;  %v1853_v54 = vld [vmem:[#allocation8 + $0x40] sm:$0xff]  }
  0xa6   :  { %v1852_v53 = vld [vmem:[#allocation8 + $0x88] sm:$0xff]  }
  0xa8   :  { %1126 = vmatpush1.bf16.msra.mxu0 %v1683_v59  ;;  %1167 = vmatpush1.bf16.msra.mxu1 %v1685_v60 }
  0xa9   :  { %1127 = vmatprep.subr.bf16.mxu0 %v1668_v61  ;;  %1168 = vmatprep.subr.bf16.mxu1 %v1670_v0 }
  0xac   :  { %1128 = vmatpush1.bf16.msra.mxu0 %v1667_v3  ;;  %1169 = vmatpush1.bf16.msra.mxu1 %v1669_v4 }
  0xad   :  { %1129 = vmatprep.subr.bf16.mxu0 %v1652_v5  ;;  %1170 = vmatprep.subr.bf16.mxu1 %v1654_v6 }
  0xb0   :  { %1130 = vmatpush1.bf16.msra.mxu0 %v1651_v11  ;;  %1171 = vmatpush1.bf16.msra.mxu1 %v1653_v12 }
  0xb1   :  { %1131 = vmatprep.subr.bf16.mxu0 %v1636_v13  ;;  %1172 = vmatprep.subr.bf16.mxu1 %v1638_v14 }
  0xb4   :  { %1132 = vmatpush1.bf16.msra.mxu0 %v1635_v19  ;;  %1173 = vmatpush1.bf16.msra.mxu1 %v1637_v20  ;;  %v1213_v19 = vld [vmem:[#allocation7] sm:$0xf]  ;;  %v1225_v20 = vsub.s32 2, %v2021_v48 }
  0xb5   :  { %1133 = vmatprep.subr.bf16.mxu0 %v1620_v21  ;;  %1174 = vmatprep.subr.bf16.mxu1 %v1622_v22  ;;  %v1221_v22 = vsub.s32 1, %v2021_v48 }
  0xb8   :  { %1134 = vmatpush1.bf16.msra.mxu0 %v1619_v23  ;;  %1175 = vmatpush1.bf16.msra.mxu1 %v1621_v24  ;;  %v1229_v24 = vsub.s32 3, %v2021_v48 }
  0xb9   :  { %1767 = vmatprep.subr.bf16.mxu0 %v1825_v26  ;;  %1789 = vmatprep.subr.bf16.mxu1 %v1826_v27 }
  0xbb   :  { %1152 = vmatmul.mubr.bf16.vlgmr.msra.gmra.mxu0 %v2024_v25  ;;  %1193 = vmatmul.mubr.bf16.vlgmr.msra.gmra.mxu1 %v2024_v25  ;;  %v1836_v25 = vld [vmem:[#allocation8 + $0xa8] sm:$0xff]  }
  0xbc   :  { %1768 = vmatpush3.bf16.msra.mxu0 %v1827_v28  ;;  %1790 = vmatpush3.bf16.msra.mxu1 %v1828_v29  ;;  %v1218_v28 = vrot.slane %v1213_v19, %v1217_v18 }
  0xbd   :  { %1769 = vmatprep.subr.bf16.mxu0 %v1829_v30  ;;  %1791 = vmatprep.subr.bf16.mxu1 %v1830_v31 }
  0xc0   :  { %1770 = vmatpush3.bf16.msra.mxu0 %v1831_v32  ;;  %1792 = vmatpush3.bf16.msra.mxu1 %v1832_v33  ;;  %v1226_v32 = vrot.slane %v1213_v19, %v1225_v20 }
  0xc1   :  { %1771 = vmatprep.subr.bf16.mxu0 %v1833_v34  ;;  %1793 = vmatprep.subr.bf16.mxu1 %v1834_v35 }
  0xc4   :  { %1772 = vmatpush3.bf16.msra.mxu0 %v1835_v36  ;;  %1794 = vmatpush3.bf16.msra.mxu1 %v1836_v25  ;;  %v1222_v36 = vrot.slane %v1213_v19, %v1221_v22 }
  0xc5   :  { %1773 = vmatprep.subr.bf16.mxu0 %v1837_v37  ;;  %1795 = vmatprep.subr.bf16.mxu1 %v1838_v38 }
  0xc8   :  { %1774 = vmatpush3.bf16.msra.mxu0 %v1839_v39  ;;  %1796 = vmatpush3.bf16.msra.mxu1 %v1840_v40  ;;  %v1230_v39 = vrot.slane %v1213_v19, %v1229_v24 }
  0xc9   :  { %1775 = vmatprep.subr.bf16.mxu0 %v1841_v41  ;;  %1797 = vmatprep.subr.bf16.mxu1 %v1842_v42 }
  0xcc   :  { %1776 = vmatpush3.bf16.msra.mxu0 %v1843_v43  ;;  %1798 = vmatpush3.bf16.msra.mxu1 %v1844_v44 }
  0xcd   :  { %1777 = vmatprep.subr.bf16.mxu0 %v1845_v45  ;;  %1799 = vmatprep.subr.bf16.mxu1 %v1846_v46 }
  0xd0   :  { %1778 = vmatpush3.bf16.msra.mxu0 %v1847_v47  ;;  %1800 = vmatpush3.bf16.msra.mxu1 %v1848_v49 }
  0xd1   :  { %1779 = vmatprep.subr.bf16.mxu0 %v1849_v50  ;;  %1801 = vmatprep.subr.bf16.mxu1 %v1850_v51 }
  0xd4   :  { %1780 = vmatpush3.bf16.msra.mxu0 %v1851_v52  ;;  %1802 = vmatpush3.bf16.msra.mxu1 %v1852_v53 }
  0xd5   :  { %1781 = vmatprep.subr.bf16.mxu0 %v1853_v54  ;;  %1803 = vmatprep.subr.bf16.mxu1 %v1854_v55 }
  0xd8   :  { %1782 = vmatpush3.bf16.msra.mxu0 %v1855_v56  ;;  %1804 = vmatpush3.bf16.msra.mxu1 %v1856_v57 }
 0x11b   :  { %v907_v58 = vpop.f32.mrf.mxu0  ;;  %v948_v59 = vpop.f32.mrf.mxu1 }
 0x11d   :  { %v909_v60 = vpop.f32.mrf.mxu0  ;;  %v950_v61 = vpop.f32.mrf.mxu1 }
 0x11f   :  { %v911_v0 = vpop.f32.mrf.mxu0  ;;  %v952_v62 = vpop.f32.mrf.mxu1 }
 0x121   :  { %v912_v63 = vpop.f32.mrf.mxu0  ;;  %v953_v1 = vpop.f32.mrf.mxu1 }
 0x13b   :  { %v989_v2 = vpop.f32.mrf.mxu0  ;;  %v1030_v3 = vpop.f32.mrf.mxu1 }
 0x13c   :  { %v1201_v21 = vmax.f32 %v907_v58, %v989_v2  ;;  %v1203_v23 = vmax.f32 %v948_v59, %v1030_v3 }
 0x13d   :  { %v991_v4 = vpop.f32.mrf.mxu0  ;;  %v1032_v5 = vpop.f32.mrf.mxu1 }
 0x13e   :  { %v1202_v26 = vmax.f32 %v909_v60, %v991_v4  ;;  %v1204_v29 = vmax.f32 %v950_v61, %v1032_v5 }
 0x13f   :  { %v993_v6 = vpop.f32.mrf.mxu0  ;;  %v1034_v7 = vpop.f32.mrf.mxu1 }
 0x141   :  { %v994_v8 = vpop.f32.mrf.mxu0  ;;  %v1035_v9 = vpop.f32.mrf.mxu1 }
 0x15b   :  { %v1071_v10 = vpop.f32.mrf.mxu0  ;;  %v1112_v11 = vpop.f32.mrf.mxu1 }
 0x15c   :  { %v1205_v27 = vmax.f32 %v1201_v21, %v1071_v10  ;;  %v1207_v30 = vmax.f32 %v1203_v23, %v1112_v11 }
 0x15d   :  { %v1073_v12 = vpop.f32.mrf.mxu0  ;;  %v1114_v13 = vpop.f32.mrf.mxu1 }
 0x15e   :  { %v1206_v33 = vmax.f32 %v1202_v26, %v1073_v12  ;;  %v1208_v25 = vmax.f32 %v1204_v29, %v1114_v13 }
 0x15f   :  { %v1075_v14 = vpop.f32.mrf.mxu0  ;;  %v1116_v15 = vpop.f32.mrf.mxu1 }
 0x161   :  { %v1076_v16 = vpop.f32.mrf.mxu0  ;;  %v1117_v17 = vpop.f32.mrf.mxu1 }
 0x17b   :  { %v1153_v31 = vpop.f32.mrf.mxu0  ;;  %v1194_v35 = vpop.f32.mrf.mxu1 }
 0x17c   :  { %v1209_v34 = vmax.f32 %v1205_v27, %v1153_v31  ;;  %v1211_v37 = vmax.f32 %v1207_v30, %v1194_v35 }
 0x17d   :  { %v1155_v38 = vpop.f32.mrf.mxu0  ;;  %v1196_v42 = vpop.f32.mrf.mxu1 }
 0x17e   :  { %v1235_v40 = vadd.f32 %v1218_v28, %v1209_v34  ;;  %v1210_v41 = vmax.f32 %v1206_v33, %v1155_v38  ;;  %v1237_v43 = vadd.f32 %v1226_v32, %v1211_v37  ;;  %v1212_v48 = vmax.f32 %v1208_v25, %v1196_v42 }
 0x17f   :  { %v1157_v44 = vpop.f32.mrf.mxu0  ;;  %v1198_v47 = vpop.f32.mrf.mxu1 }
 0x180   :  { %v1239_v45 = vmul.f32 0.01, %v1235_v40  ;;  %v1236_v46 = vadd.f32 %v1222_v36, %v1210_v41  ;;  %v1241_v49 = vmul.f32 0.01, %v1237_v43  ;;  %v1238_v50 = vadd.f32 %v1230_v39, %v1212_v48 }
 0x181   :  { %v1158_v51 = vpop.f32.mrf.mxu0  ;;  %v1199_v53 = vpop.f32.mrf.mxu1 }
 0x182   :  { %v1240_v52 = vmul.f32 0.01, %v1236_v46  ;;  %v1243_v54 = vmax.f32 %v1235_v40, %v1239_v45  ;;  %v1242_v55 = vmul.f32 0.01, %v1238_v50  ;;  %v1245_v56 = vmax.f32 %v1237_v43, %v1241_v49 }
 0x184   :  { %v1244_v57 = vmax.f32 %v1236_v46, %v1240_v52  ;;  %v1246_v58 = vmax.f32 %v1238_v50, %v1242_v55  ;;  %v1247_v60 = vpack.c.bf16 %v1243_v54, %v1243_v54  ;;  %v1249_v0 = vpack.c.bf16 %v1245_v56, %v1245_v56 }
 0x186   :  { %v1248_v59 = vpack.c.bf16 %v1244_v57, %v1244_v57  ;;  %v1250_v61 = vpack.c.bf16 %v1246_v58, %v1246_v58 }
 0x188   :  { %1539 = vmatprep.mubr.bf16.mxu0 %v1248_v59  ;;  %1579 = vmatprep.mubr.bf16.mxu1 %v1250_v61 }
 0x189   :  { %1540 = vmatmul.mubr.bf16.vlgmr.msra.gmra.mxu0 %v1247_v60  ;;  %1580 = vmatmul.mubr.bf16.vlgmr.msra.gmra.mxu1 %v1249_v0 }
 0x249   :  { %v1783_v62 = vpop.f32.mrf.mxu0  ;;  %v1805_v63 = vpop.f32.mrf.mxu1 }
 0x24b   :  { %v1784_v1 = vpop.f32.mrf.mxu0  ;;  %v1806_v3 = vpop.f32.mrf.mxu1 }
 0x24c   :  { %v1785_v2 = vadd.f32 %v1784_v1, %v1783_v62  ;;  %v1807_v4 = vadd.f32 %v1806_v3, %v1805_v63 }
 0x24d   :  { %v1786_v5 = vpop.f32.mrf.mxu0  ;;  %v1808_v6 = vpop.f32.mrf.mxu1 }
 0x24e   :  { %v1582_v7 = vadd.f32 %v1807_v4, %v1785_v2 }
 0x24f   :  { %v1787_v8 = vpop.f32.mrf.mxu0  ;;  %v1809_v9 = vpop.f32.mrf.mxu1 }
 0x250   :  { %1587 = vst [vmem:[#allocation10] sm:$0xff] %v1582_v7 }
 0x251   :  { %1592 = vsyncadd [#allocation4], 96  ;;  %s1976_s2 = smov [#allocation10]  }
 0x252   :  { %s1593_s3 = sshll.u32 %s1976_s2, 4  ;;  %s1594_s3 = int_to_ptr.vmem [resolvable:$true] %s1593_s3 }
 0x253   :  { %s1937_s13 = scalar_lea.vmem %s1594_s3, 32  ;;  %s1941_s14 = scalar_lea.vmem %s1594_s3, 128 }
 0x254   :  { %p1938_p6 = scmp.ne.s32.totalorder %s1594_s3, %s1937_s13  ;;  %p1942_p7 = scmp.lt.s32.totalorder %s1594_s3, %s1594_s3 }
 0x255   :  { %p1943_p8 = scmp.lt.s32.totalorder %s1941_s14, %s1937_s13 }
 0x257   :  { %p1944_p9 = por %p1943_p8, %p1942_p7 }
 0x259   :  { %p1945_p10 = pnand %p1944_p9, %p1938_p6 }
 0x25b   :  { %1948 = shalt.err (!%p1945_p10)
}
 0x25c   :  { %s1977_s15 = smov 32   ;;  %s1978_s16 = smov 2  }
 0x25d   :  { %1599 = dma.vmem_to_hbm [thread:$0]  %s1594_s3, 32, %s2051_s4, [#allocation4], %s1977_s15, %s1977_s15, %s1978_s16  }
 0x25e   :  { %1963 = dma.done.wait [#allocation4], 128  }
 0x25f   :  { %1964 = vsyncadd [#allocation4], 4294967168 }
 0x260   :  { %1603 = vsyncpa [#allocation3], 1 }
 0x261   :  { %1604 = vsyncpa [#allocation6], 1 }
 0x262   :  { %1605 = vsyncpa [#allocation9], 1 }
 0x263   :  { %1606 = vsyncpa [#allocation4], 1 }

</bundles_post_ra>
